<compile_context>
chip_gen: v6e
topology: v6e:2x2x1
jax: 0.10.0
libtpu: 0.0.40
codegen_flags: <defaults>
</compile_context>

<pallas_src>
import functools

import jax
import jax.numpy as jnp
from jax.experimental import pallas as pl
from jax.experimental.pallas import tpu as pltpu


def _round_up(x, m):
    return ((x + m - 1) // m) * m


def mlp_kernel(x_ref, w1_ref, b1_ref, w2_ref, b2_ref, w3_ref, b3_ref, out_ref):
    """Fused 3-layer MLP forward for one batch tile.

    x/w refs are bf16 (MXU inputs), biases and accumulators are f32.
    Weights/biases are VMEM-resident across all grid steps (constant block).
    """
    x = x_ref[...]                                          # (TILE_B, K_pad) bf16

    # Layer 1: Linear(784->256) + ReLU, f32 accumulate, f32 epilogue.
    h1 = jnp.dot(x, w1_ref[...], preferred_element_type=jnp.float32)
    h1 = jnp.maximum(h1 + b1_ref[...], 0.0)

    # Layer 2: Linear(256->256) + ReLU.
    h2 = jnp.dot(h1.astype(w2_ref.dtype), w2_ref[...],
                 preferred_element_type=jnp.float32)
    h2 = jnp.maximum(h2 + b2_ref[...], 0.0)

    # Layer 3: Linear(256->n_classes), head padded to 128 lanes so the final
    # store is a full, unmasked lane-dense vst.
    logits = jnp.dot(h2.astype(w3_ref.dtype), w3_ref[...],
                     preferred_element_type=jnp.float32)
    out_ref[...] = (logits + b3_ref[...]).astype(out_ref.dtype)


def prepare_params(w1, b1, w2, b2, w3, b3, compute_dtype=jnp.bfloat16):
    """One-time weight prep (do NOT call per forward).

    Weights are (in, out) (transposed vs torch's (out, in)).
      * pad K: 784 -> 896 (7x128) on w1 rows
      * pad N: n_classes -> 128 on w3 cols / b3
      * cast weights to bf16 (MXU inputs); biases stay f32 for the epilogue
    """
    d_in, h1 = w1.shape
    h2 = w2.shape[1]
    n_classes = w3.shape[1]
    k_pad = _round_up(d_in, 128)
    n_pad = _round_up(max(n_classes, 128), 128)

    w1_p = jnp.pad(w1, ((0, k_pad - d_in), (0, 0))).astype(compute_dtype)
    w2_c = w2.astype(compute_dtype)
    w3_p = jnp.pad(w3, ((0, 0), (0, n_pad - n_classes))).astype(compute_dtype)

    b1_r = b1.astype(jnp.float32).reshape(1, h1)
    b2_r = b2.astype(jnp.float32).reshape(1, h2)
    b3_p = jnp.pad(b3.astype(jnp.float32),
                   (0, n_pad - n_classes)).reshape(1, n_pad)
    return (w1_p, b1_r, w2_c, b2_r, w3_p, b3_p)


@functools.partial(jax.jit, static_argnames=("n_classes", "tile_b"))
def mnist_forward(x, params, n_classes, tile_b=512):
    """Pallas forward. x: (B, 784) f32 -> (B, n_classes) f32 logits."""
    w1, b1, w2, b2, w3, b3 = params
    B, d_in = x.shape
    k_pad, h1 = w1.shape
    h2, n_pad = w3.shape
    compute_dtype = w1.dtype

    # Batch tile: multiple of 8 sublanes; clamp for tiny batches.
    tile_b = min(tile_b, _round_up(B, 8))
    b_pad = _round_up(B, tile_b)

    # Only per-call data prep: pad batch + K dim and cast activations to bf16
    # (halves the x DMA bytes).
    x_p = jnp.pad(x.astype(compute_dtype),
                  ((0, b_pad - B), (0, k_pad - d_in)))

    grid = (b_pad // tile_b,)

    out_padded = pl.pallas_call(
        mlp_kernel,
        out_shape=jax.ShapeDtypeStruct((b_pad, n_pad), jnp.float32),
        grid=grid,
        in_specs=[
            # Batch-tiled activations.
            pl.BlockSpec((tile_b, k_pad), lambda i: (i, 0)),
            # Weights/biases: constant block index -> VMEM-resident across steps.
            pl.BlockSpec((k_pad, h1), lambda i: (0, 0)),
            pl.BlockSpec((1, h1), lambda i: (0, 0)),
            pl.BlockSpec((h1, h2), lambda i: (0, 0)),
            pl.BlockSpec((1, h2), lambda i: (0, 0)),
            pl.BlockSpec((h2, n_pad), lambda i: (0, 0)),
            pl.BlockSpec((1, n_pad), lambda i: (0, 0)),
        ],
        out_specs=pl.BlockSpec((tile_b, n_pad), lambda i: (i, 0)),
        compiler_params=pltpu.CompilerParams(
            # Batch tiles are independent -> shard across v7x's 2 TCs.
            dimension_semantics=("parallel",),
        ),
    )(x_p, w1, b1, w2, b2, w3, b3)

    return out_padded[:B, :n_classes]


def reference_forward(x, w1, b1, w2, b2, w3, b3, compute_dtype=jnp.bfloat16):
    """Reference with the same bf16-input / f32-accumulate numerics."""
    def lin(a, w, b):
        return jnp.dot(a.astype(compute_dtype), w.astype(compute_dtype),
                       preferred_element_type=jnp.float32) + b.astype(jnp.float32)
    a1 = jnp.maximum(lin(x, w1, b1), 0.0)
    a2 = jnp.maximum(lin(a1, w2, b2), 0.0)
    return lin(a2, w3, b3)


if __name__ == "__main__":
    B, D_IN, H, N_CLASSES = 2, 784, 256, 10

    key = jax.random.PRNGKey(0)
    kx, kw1, kb1, kw2, kb2, kw3, kb3 = jax.random.split(key, 7)

    x = jax.random.normal(kx, (B, D_IN), dtype=jnp.float32)

    # torch.nn.Linear default init: U(-1/sqrt(fan_in), 1/sqrt(fan_in)).
    # Weights stored transposed (in, out) relative to torch's (out, in).
    def init_linear(kw, kb, fan_in, fan_out):
        bound = 1.0 / jnp.sqrt(fan_in)
        w = jax.random.uniform(kw, (fan_in, fan_out), dtype=jnp.float32,
                               minval=-bound, maxval=bound)
        b = jax.random.uniform(kb, (fan_out,), dtype=jnp.float32,
                               minval=-bound, maxval=bound)
        return w, b

    w1, b1 = init_linear(kw1, kb1, D_IN, H)
    w2, b2 = init_linear(kw2, kb2, H, H)
    w3, b3 = init_linear(kw3, kb3, H, N_CLASSES)

    # One-time weight prep (pad + bf16 cast), then the hot forward path.
    params = prepare_params(w1, b1, w2, b2, w3, b3)
    params = jax.tree_util.tree_map(jax.block_until_ready, params)

    logits = mnist_forward(x, params, n_classes=N_CLASSES)
    jax.block_until_ready(logits)

    ref = reference_forward(x, w1, b1, w2, b2, w3, b3)
    assert logits.shape == (B, N_CLASSES)
    assert jnp.allclose(logits, ref, atol=1e-2, rtol=1e-2), (
        f"max abs err {jnp.max(jnp.abs(logits - ref))}")

    print("KERNEL_OK")
</pallas_src>

<mosaic_0001>
module attributes {stable_mosaic.version = 11 : i64} {
  func.func @mlp_kernel(%arg0: i32, %arg1: memref<8x896xbf16, #tpu.memory_space<vmem>>, %arg2: memref<896x256xbf16, #tpu.memory_space<vmem>>, %arg3: memref<1x256xf32, #tpu.memory_space<vmem>>, %arg4: memref<256x256xbf16, #tpu.memory_space<vmem>>, %arg5: memref<1x256xf32, #tpu.memory_space<vmem>>, %arg6: memref<256x128xbf16, #tpu.memory_space<vmem>>, %arg7: memref<1x128xf32, #tpu.memory_space<vmem>>, %arg8: memref<8x128xf32, #tpu.memory_space<vmem>>) attributes {dimension_semantics = [#tpu.dimension_semantics<parallel>], iteration_bounds = array<i64: 1>, scalar_prefetch = 0 : i64, scratch_operands = 0 : i64, tpu.core_type = #tpu.core_type<tc>, window_params = [{transform_indices = @transform_0, window_bounds = array<i64: 8, 896>}, {pipeline_mode = #tpu.pipeline_mode<synchronous>, transform_indices = @transform_1, window_bounds = array<i64: 896, 256>}, {pipeline_mode = #tpu.pipeline_mode<synchronous>, transform_indices = @transform_2, window_bounds = array<i64: 1, 256>}, {pipeline_mode = #tpu.pipeline_mode<synchronous>, transform_indices = @transform_3, window_bounds = array<i64: 256, 256>}, {pipeline_mode = #tpu.pipeline_mode<synchronous>, transform_indices = @transform_4, window_bounds = array<i64: 1, 256>}, {pipeline_mode = #tpu.pipeline_mode<synchronous>, transform_indices = @transform_5, window_bounds = array<i64: 256, 128>}, {pipeline_mode = #tpu.pipeline_mode<synchronous>, transform_indices = @transform_6, window_bounds = array<i64: 1, 128>}, {transform_indices = @transform_7, window_bounds = array<i64: 8, 128>}]} {
    %c0 = arith.constant 0 : index
    %c0_0 = arith.constant 0 : index
    %0 = vector.load %arg1[%c0, %c0_0] : memref<8x896xbf16, #tpu.memory_space<vmem>>, vector<8x896xbf16>
    %c0_1 = arith.constant 0 : index
    %c0_2 = arith.constant 0 : index
    %1 = vector.load %arg2[%c0_1, %c0_2] : memref<896x256xbf16, #tpu.memory_space<vmem>>, vector<896x256xbf16>
    %cst = arith.constant dense<0.000000e+00> : vector<8x256xf32>
    %2 = tpu.matmul %0, %1, %cst {dimension_numbers = #tpu.dot_dimension_numbers<[1], [0], [0], [1], [0, 0, 1, 1], [], []>} : vector<8x896xbf16>, vector<896x256xbf16>, vector<8x256xf32> -> vector<8x256xf32>
    %c0_3 = arith.constant 0 : index
    %c0_4 = arith.constant 0 : index
    %3 = vector.load %arg3[%c0_3, %c0_4] : memref<1x256xf32, #tpu.memory_space<vmem>>, vector<1x256xf32>
    %4 = vector.broadcast %3 : vector<1x256xf32> to vector<8x256xf32>
    %5 = arith.addf %2, %4 : vector<8x256xf32>
    %cst_5 = arith.constant 0.000000e+00 : f32
    %6 = vector.broadcast %cst_5 : f32 to vector<8x256xf32>
    %7 = arith.maximumf %5, %6 : vector<8x256xf32>
    %8 = arith.truncf %7 : vector<8x256xf32> to vector<8x256xbf16>
    %c0_6 = arith.constant 0 : index
    %c0_7 = arith.constant 0 : index
    %9 = vector.load %arg4[%c0_6, %c0_7] : memref<256x256xbf16, #tpu.memory_space<vmem>>, vector<256x256xbf16>
    %cst_8 = arith.constant dense<0.000000e+00> : vector<8x256xf32>
    %10 = tpu.matmul %8, %9, %cst_8 {dimension_numbers = #tpu.dot_dimension_numbers<[1], [0], [0], [1], [0, 0, 1, 1], [], []>} : vector<8x256xbf16>, vector<256x256xbf16>, vector<8x256xf32> -> vector<8x256xf32>
    %c0_9 = arith.constant 0 : index
    %c0_10 = arith.constant 0 : index
    %11 = vector.load %arg5[%c0_9, %c0_10] : memref<1x256xf32, #tpu.memory_space<vmem>>, vector<1x256xf32>
    %12 = vector.broadcast %11 : vector<1x256xf32> to vector<8x256xf32>
    %13 = arith.addf %10, %12 : vector<8x256xf32>
    %cst_11 = arith.constant 0.000000e+00 : f32
    %14 = vector.broadcast %cst_11 : f32 to vector<8x256xf32>
    %15 = arith.maximumf %13, %14 : vector<8x256xf32>
    %16 = arith.truncf %15 : vector<8x256xf32> to vector<8x256xbf16>
    %c0_12 = arith.constant 0 : index
    %c0_13 = arith.constant 0 : index
    %17 = vector.load %arg6[%c0_12, %c0_13] : memref<256x128xbf16, #tpu.memory_space<vmem>>, vector<256x128xbf16>
    %cst_14 = arith.constant dense<0.000000e+00> : vector<8x128xf32>
    %18 = tpu.matmul %16, %17, %cst_14 {dimension_numbers = #tpu.dot_dimension_numbers<[1], [0], [0], [1], [0, 0, 1, 1], [], []>} : vector<8x256xbf16>, vector<256x128xbf16>, vector<8x128xf32> -> vector<8x128xf32>
    %c0_15 = arith.constant 0 : index
    %c0_16 = arith.constant 0 : index
    %19 = vector.load %arg7[%c0_15, %c0_16] : memref<1x128xf32, #tpu.memory_space<vmem>>, vector<1x128xf32>
    %20 = vector.broadcast %19 : vector<1x128xf32> to vector<8x128xf32>
    %21 = arith.addf %18, %20 : vector<8x128xf32>
    %c0_17 = arith.constant 0 : index
    %c0_18 = arith.constant 0 : index
    %22 = vector.load %arg8[%c0_17, %c0_18] : memref<8x128xf32, #tpu.memory_space<vmem>>, vector<8x128xf32>
    tpu.vector_store %arg8[%c0_17, %c0_18], %21 {strides = array<i32>} : memref<8x128xf32, #tpu.memory_space<vmem>>, vector<8x128xf32>,
    return
  }
  func.func @transform_0(%arg0: i32) -> (i32, i32) {
    %c0_i32 = arith.constant 0 : i32
    %c0_i32_0 = arith.constant 0 : i32
    return %arg0, %c0_i32 : i32, i32
  }
  func.func @transform_1(%arg0: i32) -> (i32, i32) {
    %c0_i32 = arith.constant 0 : i32
    %c0_i32_0 = arith.constant 0 : i32
    %c0_i32_1 = arith.constant 0 : i32
    return %c0_i32, %c0_i32_0 : i32, i32
  }
  func.func @transform_2(%arg0: i32) -> (i32, i32) {
    %c0_i32 = arith.constant 0 : i32
    %c0_i32_0 = arith.constant 0 : i32
    %c0_i32_1 = arith.constant 0 : i32
    return %c0_i32, %c0_i32_0 : i32, i32
  }
  func.func @transform_3(%arg0: i32) -> (i32, i32) {
    %c0_i32 = arith.constant 0 : i32
    %c0_i32_0 = arith.constant 0 : i32
    %c0_i32_1 = arith.constant 0 : i32
    return %c0_i32, %c0_i32_0 : i32, i32
  }
  func.func @transform_4(%arg0: i32) -> (i32, i32) {
    %c0_i32 = arith.constant 0 : i32
    %c0_i32_0 = arith.constant 0 : i32
    %c0_i32_1 = arith.constant 0 : i32
    return %c0_i32, %c0_i32_0 : i32, i32
  }
  func.func @transform_5(%arg0: i32) -> (i32, i32) {
    %c0_i32 = arith.constant 0 : i32
    %c0_i32_0 = arith.constant 0 : i32
    %c0_i32_1 = arith.constant 0 : i32
    return %c0_i32, %c0_i32_0 : i32, i32
  }
  func.func @transform_6(%arg0: i32) -> (i32, i32) {
    %c0_i32 = arith.constant 0 : i32
    %c0_i32_0 = arith.constant 0 : i32
    %c0_i32_1 = arith.constant 0 : i32
    return %c0_i32, %c0_i32_0 : i32, i32
  }
  func.func @transform_7(%arg0: i32) -> (i32, i32) {
    %c0_i32 = arith.constant 0 : i32
    %c0_i32_0 = arith.constant 0 : i32
    return %arg0, %c0_i32 : i32, i32
  }
}

</mosaic_0001>

<bundles_post_ra>
// kernel: mnist_forward.1
= control target key start
LH: loop header
LB: loop body
LE: loop exit
PB: predicated region body
PF: predicated region fallthrough
CT: control target
= control target key end

     0   :  { %12 = vsyncpa [#allocation3], 0  ;;  %s1968_s0 = inlined_call_operand.vmem [shape: bf16[8,896], index: 0, kind: input, shape index: {}]   ;;  %s1969_s1 = inlined_call_operand.hbm [shape: bf16[896,256], index: 1, kind: input, shape index: {}]   ;;  %s1970_s2 = inlined_call_operand.vmem [shape: f32[1,256], index: 2, kind: input, shape index: {}]   ;;  %s1971_s3 = inlined_call_operand.hbm [shape: bf16[256,256], index: 3, kind: input, shape index: {}]   ;;  %s1972_s4 = inlined_call_operand.vmem [shape: f32[1,256], index: 4, kind: input, shape index: {}]   ;;  %s1973_s5 = inlined_call_operand.hbm [shape: bf16[256,128], index: 5, kind: input, shape index: {}]   ;;  %s1974_s6 = inlined_call_operand.vmem [shape: f32[1,128], index: 6, kind: input, shape index: {}]   ;;  %s1975_s7 = inlined_call_operand.vmem [shape: f32[8,128], index: 7, kind: output, shape index: {}]  }
   0x1   :  { %13 = vsyncpa [#allocation5], 0  ;;  %s1881_s24 = smov [#allocation4]   ;;  %s1882_s26 = smov [#allocation2]  }
   0x2   :  { %s35_s25 = sshll.u32 %s1881_s24, 4  ;;  %s21_s27 = sshll.u32 %s1882_s26, 4  ;;  %s36_s25 = int_to_ptr.vmem [resolvable:$true] %s35_s25  ;;  %s22_s27 = int_to_ptr.vmem [resolvable:$true] %s21_s27 }
   0x3   :  { %s1825_s28 = scalar_lea.vmem %s36_s25, 4096  ;;  %p1830_p1 = scmp.lt.s32.totalorder %s36_s25, %s36_s25 }
   0x4   :  { %p1826_p0 = scmp.ne.s32.totalorder %s36_s25, %s1825_s28  ;;  %p1831_p2 = scmp.lt.s32.totalorder %s1825_s28, %s1825_s28 }
   0x6   :  { %p1832_p3 = por %p1831_p2, %p1830_p1 }
   0x8   :  { %p1833_p4 = pnand %p1832_p3, %p1826_p0 }
   0xa   :  { %1836 = shalt.err (!%p1833_p4)
}
   0xb   :  { %s1883_s29 = smov 128   ;;  %s1884_s30 = smov 8  }
   0xc   :  { %41 = dma.hbm_to_vmem [thread:$0]  %s1971_s3, 4096, %s36_s25, [#allocation5], %s1883_s29, %s1883_s29, %s1884_s30  }
   0xd   :  { %s1845_s10 = scalar_lea.vmem %s22_s27, 14336  ;;  %p1850_p6 = scmp.lt.s32.totalorder %s22_s27, %s22_s27 }
   0xe   :  { %p1846_p5 = scmp.ne.s32.totalorder %s22_s27, %s1845_s10  ;;  %p1851_p7 = scmp.lt.s32.totalorder %s1845_s10, %s1845_s10 }
  0x10   :  { %p1852_p8 = por %p1851_p7, %p1850_p6 }
  0x12   :  { %p1853_p9 = pnand %p1852_p8, %p1846_p5 }
  0x14   :  { %1856 = shalt.err (!%p1853_p9)
}
  0x15   :  { %27 = dma.hbm_to_vmem [thread:$0]  %s1969_s1, 14336, %s22_s27, [#allocation3], %s1883_s29, %s1883_s29, %s1884_s30  }
  0x16   :  { %s1885_s13 = smov [#allocation6]  }
  0x17   :  { %s49_s14 = sshll.u32 %s1885_s13, 4  ;;  %s50_s14 = int_to_ptr.vmem [resolvable:$true] %s49_s14 }
  0x18   :  { %s1865_s15 = scalar_lea.vmem %s50_s14, 2048  ;;  %p1870_p11 = scmp.lt.s32.totalorder %s50_s14, %s50_s14 }
  0x19   :  { %p1866_p10 = scmp.ne.s32.totalorder %s50_s14, %s1865_s15  ;;  %p1871_p12 = scmp.lt.s32.totalorder %s1865_s15, %s1865_s15 }
  0x1b   :  { %p1872_p13 = por %p1871_p12, %p1870_p11 }
  0x1d   :  { %p1873_p0 = pnand %p1872_p13, %p1866_p10 }
  0x1f   :  { %1876 = shalt.err (!%p1873_p0)
}
  0x20   :  { %s1886_s3 = smov 64   ;;  %s1887_s16 = smov 4  }
  0x21   :  { %55 = dma.hbm_to_vmem [thread:$0]  %s1973_s5, 2048, %s50_s14, [#allocation5], %s1886_s3, %s1886_s3, %s1887_s16  }
  0x22   :  { %1877 = dma.done.wait [#allocation3], 14336  }
  0x23   :  { %1878 = vsyncadd [#allocation3], 4294952960 }
  0x24   :  { %1879 = dma.done.wait [#allocation5], 6144  }
  0x25   :  { %1880 = vsyncadd [#allocation5], 4294961152  ;;  %v1578_v0 = vld [vmem:[#allocation2 + $0x74] ss:$8 sps:$4 sm:$0xff]   ;;  %v1580_v1 = vld [vmem:[#allocation2 + $0x70] ss:$8 sps:$4 sm:$0xff]  }
  0x26   :  { %781 = vmatprep.subr.bf16.mxu0 %v1578_v0  ;;  %v1581_v2 = vld [vmem:[#allocation2 + $0x174] ss:$8 sps:$4 sm:$0xff]   ;;  %v1583_v3 = vld [vmem:[#allocation2 + $0x170] ss:$8 sps:$4 sm:$0xff]   ;;  %v1584_v4 = vld [vmem:[#allocation2 + $0x64] ss:$8 sps:$4 sm:$0xff]  }
  0x27   :  { %782 = vmatpush1.bf16.msra.mxu0 %v1580_v1  ;;  %v1586_v5 = vld [vmem:[#allocation2 + $0x60] ss:$8 sps:$4 sm:$0xff]   ;;  %822 = vmatprep.subr.bf16.mxu1 %v1581_v2  ;;  %v1587_v6 = vld [vmem:[#allocation2 + $0x164] ss:$8 sps:$4 sm:$0xff]   ;;  %v1590_v8 = vld [vmem:[#allocation2 + $0x54] ss:$8 sps:$4 sm:$0xff]  }
  0x28   :  { %823 = vmatpush1.bf16.msra.mxu1 %v1583_v3  ;;  %783 = vmatprep.subr.bf16.mxu0 %v1584_v4  ;;  %v1589_v7 = vld [vmem:[#allocation2 + $0x160] ss:$8 sps:$4 sm:$0xff]   ;;  %v1592_v9 = vld [vmem:[#allocation2 + $0x50] ss:$8 sps:$4 sm:$0xff]   ;;  %v1593_v10 = vld [vmem:[#allocation2 + $0x154] ss:$8 sps:$4 sm:$0xff]  }
  0x29   :  { %824 = vmatprep.subr.bf16.mxu1 %v1587_v6  ;;  %v1596_v11 = vld [vmem:[#allocation2 + $0x44] ss:$8 sps:$4 sm:$0xff]   ;;  %v1595_v12 = vld [vmem:[#allocation2 + $0x150] ss:$8 sps:$4 sm:$0xff]   ;;  %v1598_v14 = vld [vmem:[#allocation2 + $0x40] ss:$8 sps:$4 sm:$0xff]  }
  0x2a   :  { %v1599_v13 = vld [vmem:[#allocation2 + $0x144] ss:$8 sps:$4 sm:$0xff]   ;;  %v1602_v15 = vld [vmem:[#allocation2 + $0x34] ss:$8 sps:$4 sm:$0xff]   ;;  %v1601_v16 = vld [vmem:[#allocation2 + $0x140] ss:$8 sps:$4 sm:$0xff]  }
  0x2b   :  { %784 = vmatpush1.bf16.msra.mxu0 %v1586_v5  ;;  %v1605_v17 = vld [vmem:[#allocation2 + $0x134] ss:$8 sps:$4 sm:$0xff]   ;;  %v1604_v18 = vld [vmem:[#allocation2 + $0x30] ss:$8 sps:$4 sm:$0xff]   ;;  %v1608_v19 = vld [vmem:[#allocation2 + $0x24] ss:$8 sps:$4 sm:$0xff]  }
  0x2c   :  { %785 = vmatprep.subr.bf16.mxu0 %v1590_v8  ;;  %825 = vmatpush1.bf16.msra.mxu1 %v1589_v7  ;;  %v1607_v20 = vld [vmem:[#allocation2 + $0x130] ss:$8 sps:$4 sm:$0xff]   ;;  %v1611_v21 = vld [vmem:[#allocation2 + $0x124] ss:$8 sps:$4 sm:$0xff]   ;;  %v1610_v22 = vld [vmem:[#allocation2 + $0x20] ss:$8 sps:$4 sm:$0xff]  }
  0x2d   :  { %826 = vmatprep.subr.bf16.mxu1 %v1593_v10  ;;  %v1614_v23 = vld [vmem:[#allocation2 + $0x14] ss:$8 sps:$4 sm:$0xff]   ;;  %v1613_v24 = vld [vmem:[#allocation2 + $0x120] ss:$8 sps:$4 sm:$0xff]   ;;  %v1616_v26 = vld [vmem:[#allocation2 + $0x10] ss:$8 sps:$4 sm:$0xff]  }
  0x2e   :  { %v1617_v25 = vld [vmem:[#allocation2 + $0x114] ss:$8 sps:$4 sm:$0xff]   ;;  %v1620_v27 = vld [vmem:[#allocation2 + $0x4] ss:$8 sps:$4 sm:$0xff]   ;;  %v1619_v28 = vld [vmem:[#allocation2 + $0x110] ss:$8 sps:$4 sm:$0xff]  }
  0x2f   :  { %786 = vmatpush1.bf16.msra.mxu0 %v1592_v9  ;;  %v1623_v29 = vld [vmem:[#allocation2 + $0x104] ss:$8 sps:$4 sm:$0xff]   ;;  %v1622_v30 = vld [vmem:[#allocation2] ss:$8 sps:$4 sm:$0xff]   ;;  %v1626_v31 = vld [vmem:[#allocation2 + $0xf4] ss:$8 sps:$4 sm:$0xff]  }
  0x30   :  { %787 = vmatprep.subr.bf16.mxu0 %v1596_v11  ;;  %827 = vmatpush1.bf16.msra.mxu1 %v1595_v12  ;;  %v1625_v32 = vld [vmem:[#allocation2 + $0x100] ss:$8 sps:$4 sm:$0xff]   ;;  %v1629_v33 = vld [vmem:[#allocation2 + $0x1f4] ss:$8 sps:$4 sm:$0xff]   ;;  %v1628_v34 = vld [vmem:[#allocation2 + $0xf0] ss:$8 sps:$4 sm:$0xff]  }
  0x31   :  { %828 = vmatprep.subr.bf16.mxu1 %v1599_v13  ;;  %v1632_v35 = vld [vmem:[#allocation2 + $0xe4] ss:$8 sps:$4 sm:$0xff]   ;;  %v1631_v36 = vld [vmem:[#allocation2 + $0x1f0] ss:$8 sps:$4 sm:$0xff]   ;;  %v1634_v38 = vld [vmem:[#allocation2 + $0xe0] ss:$8 sps:$4 sm:$0xff]  }
  0x32   :  { %v1635_v37 = vld [vmem:[#allocation2 + $0x1e4] ss:$8 sps:$4 sm:$0xff]   ;;  %v1638_v39 = vld [vmem:[#allocation2 + $0xd4] ss:$8 sps:$4 sm:$0xff]   ;;  %v1637_v40 = vld [vmem:[#allocation2 + $0x1e0] ss:$8 sps:$4 sm:$0xff]  }
  0x33   :  { %788 = vmatpush1.bf16.msra.mxu0 %v1598_v14  ;;  %v1641_v41 = vld [vmem:[#allocation2 + $0x1d4] ss:$8 sps:$4 sm:$0xff]   ;;  %v1640_v42 = vld [vmem:[#allocation2 + $0xd0] ss:$8 sps:$4 sm:$0xff]   ;;  %v1644_v43 = vld [vmem:[#allocation2 + $0xc4] ss:$8 sps:$4 sm:$0xff]  }
  0x34   :  { %789 = vmatprep.subr.bf16.mxu0 %v1602_v15  ;;  %829 = vmatpush1.bf16.msra.mxu1 %v1601_v16  ;;  %v1643_v44 = vld [vmem:[#allocation2 + $0x1d0] ss:$8 sps:$4 sm:$0xff]   ;;  %v1647_v45 = vld [vmem:[#allocation2 + $0x1c4] ss:$8 sps:$4 sm:$0xff]   ;;  %v1646_v47 = vld [vmem:[#allocation2 + $0xc0] ss:$8 sps:$4 sm:$0xff]  }
  0x35   :  { %830 = vmatprep.subr.bf16.mxu1 %v1605_v17  ;;  %v68_v46 = vld [vmem:[%s1968_s0] sm:$0xff]  ;;  %v1650_v49 = vld [vmem:[#allocation2 + $0xb4] ss:$8 sps:$4 sm:$0xff]   ;;  %v69_v50 = vld [vmem:[%s1968_s0 + $0x8] sm:$0xff]  ;;  %v1888_v15 = vmov 0  }
  0x36   :  { %v1381_v48 = vcombine.high %v68_v46, %v68_v46  ;;  %v1649_v51 = vld [vmem:[#allocation2 + $0x1c0] ss:$8 sps:$4 sm:$0xff]   ;;  %v1383_v52 = vcombine.high %v69_v50, %v69_v50  ;;  %v1653_v53 = vld [vmem:[#allocation2 + $0x1b4] ss:$8 sps:$4 sm:$0xff]   ;;  %v1652_v54 = vld [vmem:[#allocation2 + $0xb0] ss:$8 sps:$4 sm:$0xff]   ;;  %v1380_v5 = vcombine.low %v68_v46, %v68_v46  ;;  %v1382_v8 = vcombine.low %v69_v50, %v69_v50 }
  0x37   :  { %790 = vmatpush1.bf16.msra.mxu0 %v1604_v18  ;;  %v1656_v55 = vld [vmem:[#allocation2 + $0xa4] ss:$8 sps:$4 sm:$0xff]   ;;  %v1655_v56 = vld [vmem:[#allocation2 + $0x1b0] ss:$8 sps:$4 sm:$0xff]   ;;  %v1658_v58 = vld [vmem:[#allocation2 + $0xa0] ss:$8 sps:$4 sm:$0xff]  }
  0x38   :  { %791 = vmatprep.subr.bf16.mxu0 %v1608_v19  ;;  %831 = vmatpush1.bf16.msra.mxu1 %v1607_v20  ;;  %v1659_v57 = vld [vmem:[#allocation2 + $0x1a4] ss:$8 sps:$4 sm:$0xff]   ;;  %v1662_v59 = vld [vmem:[#allocation2 + $0x94] ss:$8 sps:$4 sm:$0xff]   ;;  %v1661_v60 = vld [vmem:[#allocation2 + $0x1a0] ss:$8 sps:$4 sm:$0xff]  }
  0x39   :  { %832 = vmatprep.subr.bf16.mxu1 %v1611_v21  ;;  %813 = vmatprep.mubr.bf16.mxu0 %v1381_v48  ;;  %v1665_v61 = vld [vmem:[#allocation2 + $0x194] ss:$8 sps:$4 sm:$0xff]   ;;  %v1664_v62 = vld [vmem:[#allocation2 + $0x90] ss:$8 sps:$4 sm:$0xff]   ;;  %v1668_v63 = vld [vmem:[#allocation2 + $0x84] ss:$8 sps:$4 sm:$0xff]  }
  0x3a   :  { %854 = vmatprep.mubr.bf16.mxu1 %v1383_v52  ;;  %v1667_v0 = vld [vmem:[#allocation2 + $0x190] ss:$8 sps:$4 sm:$0xff]   ;;  %v1671_v1 = vld [vmem:[#allocation2 + $0x184] ss:$8 sps:$4 sm:$0xff]   ;;  %v1670_v2 = vld [vmem:[#allocation2 + $0x80] ss:$8 sps:$4 sm:$0xff]  }
  0x3b   :  { %792 = vmatpush1.bf16.msra.mxu0 %v1610_v22  ;;  %v1678_v3 = vld [vmem:[#allocation2 + $0x274] ss:$8 sps:$4 sm:$0xff]   ;;  %v1675_v4 = vld [vmem:[#allocation2 + $0x180] ss:$8 sps:$4 sm:$0xff]   ;;  %v1676_v7 = vld [vmem:[#allocation2 + $0x270] ss:$8 sps:$4 sm:$0xff]  }
  0x3c   :  { %793 = vmatprep.subr.bf16.mxu0 %v1614_v23  ;;  %833 = vmatpush1.bf16.msra.mxu1 %v1613_v24  ;;  %v1704_v6 = vld [vmem:[#allocation2 + $0x374] ss:$8 sps:$4 sm:$0xff]   ;;  %v1683_v9 = vld [vmem:[#allocation2 + $0x264] ss:$8 sps:$4 sm:$0xff]   ;;  %v1702_v10 = vld [vmem:[#allocation2 + $0x370] ss:$8 sps:$4 sm:$0xff]  }
  0x3d   :  { %834 = vmatprep.subr.bf16.mxu1 %v1617_v25  ;;  %v1710_v11 = vld [vmem:[#allocation2 + $0x364] ss:$8 sps:$4 sm:$0xff]   ;;  %v1681_v12 = vld [vmem:[#allocation2 + $0x260] ss:$8 sps:$4 sm:$0xff]   ;;  %v1686_v13 = vld [vmem:[#allocation2 + $0x254] ss:$8 sps:$4 sm:$0xff]  }
  0x3e   :  { %v1708_v14 = vld [vmem:[#allocation2 + $0x360] ss:$8 sps:$4 sm:$0xff]   ;;  %v1716_v16 = vld [vmem:[#allocation2 + $0x354] ss:$8 sps:$4 sm:$0xff]   ;;  %v1684_v17 = vld [vmem:[#allocation2 + $0x250] ss:$8 sps:$4 sm:$0xff]  }
  0x3f   :  { %794 = vmatpush1.bf16.msra.mxu0 %v1616_v26  ;;  %v1689_v18 = vld [vmem:[#allocation2 + $0x244] ss:$8 sps:$4 sm:$0xff]   ;;  %v1687_v19 = vld [vmem:[#allocation2 + $0x240] ss:$8 sps:$4 sm:$0xff]   ;;  %v1714_v20 = vld [vmem:[#allocation2 + $0x350] ss:$8 sps:$4 sm:$0xff]  }
  0x40   :  { %795 = vmatprep.subr.bf16.mxu0 %v1620_v27  ;;  %835 = vmatpush1.bf16.msra.mxu1 %v1619_v28  ;;  %v1722_v21 = vld [vmem:[#allocation2 + $0x344] ss:$8 sps:$4 sm:$0xff]   ;;  %v1692_v22 = vld [vmem:[#allocation2 + $0x234] ss:$8 sps:$4 sm:$0xff]   ;;  %v1720_v23 = vld [vmem:[#allocation2 + $0x340] ss:$8 sps:$4 sm:$0xff]  }
  0x41   :  { %836 = vmatprep.subr.bf16.mxu1 %v1623_v29  ;;  %v1728_v24 = vld [vmem:[#allocation2 + $0x334] ss:$8 sps:$4 sm:$0xff]   ;;  %v1690_v26 = vld [vmem:[#allocation2 + $0x230] ss:$8 sps:$4 sm:$0xff]   ;;  %v1695_v28 = vld [vmem:[#allocation2 + $0x224] ss:$8 sps:$4 sm:$0xff]  }
  0x42   :  { %v1947_v25 = vld [vmem:[%s1968_s0 + $0x10] sm:$0xff]  ;;  %v1725_v48 = vld [vmem:[#allocation2 + $0x2c4] ss:$8 sps:$4 sm:$0xff]  }
  0x43   :  { %796 = vmatpush1.bf16.msra.mxu0 %v1622_v30  ;;  %v1385_v27 = vcombine.high %v1947_v25, %v1947_v25  ;;  %v1726_v29 = vld [vmem:[#allocation2 + $0x330] ss:$8 sps:$4 sm:$0xff]   ;;  %v1734_v30 = vld [vmem:[#allocation2 + $0x324] ss:$8 sps:$4 sm:$0xff]   ;;  %v1719_v46 = vld [vmem:[#allocation2 + $0x2d4] ss:$8 sps:$4 sm:$0xff]  }
  0x44   :  { %797 = vmatprep.subr.bf16.mxu0 %v1626_v31  ;;  %837 = vmatpush1.bf16.msra.mxu1 %v1625_v32  ;;  %v1693_v31 = vld [vmem:[#allocation2 + $0x220] ss:$8 sps:$4 sm:$0xff]   ;;  %v1698_v32 = vld [vmem:[#allocation2 + $0x214] ss:$8 sps:$4 sm:$0xff]   ;;  %v1737_v52 = vld [vmem:[#allocation2 + $0x2a4] ss:$8 sps:$4 sm:$0xff]  }
  0x45   :  { %838 = vmatprep.subr.bf16.mxu1 %v1629_v33  ;;  %v1732_v33 = vld [vmem:[#allocation2 + $0x320] ss:$8 sps:$4 sm:$0xff]   ;;  %v1731_v50 = vld [vmem:[#allocation2 + $0x2b4] ss:$8 sps:$4 sm:$0xff]  }
  0x47   :  { %798 = vmatpush2.bf16.msra.mxu0 %v1628_v34  ;;  %v1740_v34 = vld [vmem:[#allocation2 + $0x314] ss:$8 sps:$4 sm:$0xff]  }
  0x48   :  { %799 = vmatprep.subr.bf16.mxu0 %v1632_v35  ;;  %839 = vmatpush2.bf16.msra.mxu1 %v1631_v36  ;;  %v1696_v35 = vld [vmem:[#allocation2 + $0x210] ss:$8 sps:$4 sm:$0xff]   ;;  %v1701_v36 = vld [vmem:[#allocation2 + $0x204] ss:$8 sps:$4 sm:$0xff]  }
  0x49   :  { %840 = vmatprep.subr.bf16.mxu1 %v1635_v37  ;;  %v1738_v37 = vld [vmem:[#allocation2 + $0x310] ss:$8 sps:$4 sm:$0xff]  }
  0x4b   :  { %800 = vmatpush2.bf16.msra.mxu0 %v1634_v38  ;;  %v1746_v38 = vld [vmem:[#allocation2 + $0x304] ss:$8 sps:$4 sm:$0xff]  }
  0x4c   :  { %801 = vmatprep.subr.bf16.mxu0 %v1638_v39  ;;  %841 = vmatpush2.bf16.msra.mxu1 %v1637_v40  ;;  %v1699_v39 = vld [vmem:[#allocation2 + $0x200] ss:$8 sps:$4 sm:$0xff]   ;;  %v1707_v40 = vld [vmem:[#allocation2 + $0x2f4] ss:$8 sps:$4 sm:$0xff]  }
  0x4d   :  { %842 = vmatprep.subr.bf16.mxu1 %v1641_v41  ;;  %v1744_v41 = vld [vmem:[#allocation2 + $0x300] ss:$8 sps:$4 sm:$0xff]  }
  0x4f   :  { %802 = vmatpush2.bf16.msra.mxu0 %v1640_v42  ;;  %v1705_v42 = vld [vmem:[#allocation2 + $0x2f0] ss:$8 sps:$4 sm:$0xff]  }
  0x50   :  { %803 = vmatprep.subr.bf16.mxu0 %v1644_v43  ;;  %843 = vmatpush2.bf16.msra.mxu1 %v1643_v44  ;;  %v1713_v43 = vld [vmem:[#allocation2 + $0x2e4] ss:$8 sps:$4 sm:$0xff]   ;;  %v1750_v44 = vld [vmem:[%s1968_s0 + $0x18] ss:$0 sps:$4 sm:$0xff]  }
  0x51   :  { %844 = vmatprep.subr.bf16.mxu1 %v1647_v45  ;;  %v1711_v45 = vld [vmem:[#allocation2 + $0x2e0] ss:$8 sps:$4 sm:$0xff]  }
  0x53   :  { %804 = vmatpush2.bf16.msra.mxu0 %v1646_v47  ;;  %v1717_v47 = vld [vmem:[#allocation2 + $0x2d0] ss:$8 sps:$4 sm:$0xff]  }
  0x54   :  { %805 = vmatprep.subr.bf16.mxu0 %v1650_v49  ;;  %845 = vmatpush2.bf16.msra.mxu1 %v1649_v51  ;;  %v1723_v49 = vld [vmem:[#allocation2 + $0x2c0] ss:$8 sps:$4 sm:$0xff]   ;;  %v1729_v51 = vld [vmem:[#allocation2 + $0x2b0] ss:$8 sps:$4 sm:$0xff]  }
  0x55   :  { %846 = vmatprep.subr.bf16.mxu1 %v1653_v53  ;;  %v1735_v53 = vld [vmem:[#allocation2 + $0x2a0] ss:$8 sps:$4 sm:$0xff]  }
  0x57   :  { %806 = vmatpush2.bf16.msra.mxu0 %v1652_v54  ;;  %v1743_v54 = vld [vmem:[#allocation2 + $0x294] ss:$8 sps:$4 sm:$0xff]  }
  0x58   :  { %807 = vmatprep.subr.bf16.mxu0 %v1656_v55  ;;  %847 = vmatpush2.bf16.msra.mxu1 %v1655_v56  ;;  %v1741_v55 = vld [vmem:[#allocation2 + $0x290] ss:$8 sps:$4 sm:$0xff]   ;;  %v1749_v56 = vld [vmem:[#allocation2 + $0x284] ss:$8 sps:$4 sm:$0xff]  }
  0x59   :  { %848 = vmatprep.subr.bf16.mxu1 %v1659_v57  ;;  %v1747_v57 = vld [vmem:[#allocation2 + $0x280] ss:$8 sps:$4 sm:$0xff]  }
  0x5b   :  { %808 = vmatpush2.bf16.msra.mxu0 %v1658_v58  ;;  %v1384_v58 = vcombine.low %v1947_v25, %v1947_v25  ;;  %v1800_v25 = vld [vmem:[#allocation4 + $0x84] ss:$8 sps:$4 sm:$0xff]  }
  0x5c   :  { %809 = vmatprep.subr.bf16.mxu0 %v1662_v59  ;;  %849 = vmatpush2.bf16.msra.mxu1 %v1661_v60  ;;  %v1753_v59 = vld [vmem:[#allocation4 + $0x70] ss:$8 sps:$4 sm:$0xff]   ;;  %v1755_v60 = vld [vmem:[#allocation4 + $0x74] ss:$8 sps:$4 sm:$0xff]  }
  0x5d   :  { %850 = vmatprep.subr.bf16.mxu1 %v1665_v61  ;;  %v1758_v61 = vld [vmem:[#allocation4 + $0x64] ss:$8 sps:$4 sm:$0xff]  }
  0x5f   :  { %810 = vmatpush2.bf16.msra.mxu0 %v1664_v62  ;;  %v1756_v62 = vld [vmem:[#allocation4 + $0x60] ss:$8 sps:$4 sm:$0xff]  }
  0x60   :  { %811 = vmatprep.subr.bf16.mxu0 %v1668_v63  ;;  %851 = vmatpush2.bf16.msra.mxu1 %v1667_v0  ;;  %v1761_v63 = vld [vmem:[#allocation4 + $0x54] ss:$8 sps:$4 sm:$0xff]   ;;  %v1759_v0 = vld [vmem:[#allocation4 + $0x50] ss:$8 sps:$4 sm:$0xff]  }
  0x61   :  { %852 = vmatprep.subr.bf16.mxu1 %v1671_v1  ;;  %v1764_v1 = vld [vmem:[#allocation4 + $0x44] ss:$8 sps:$4 sm:$0xff]  }
  0x63   :  { %812 = vmatpush2.bf16.msra.mxu0 %v1670_v2  ;;  %v1762_v2 = vld [vmem:[#allocation4 + $0x40] ss:$8 sps:$4 sm:$0xff]  }
  0x64   :  { %863 = vmatprep.subr.bf16.mxu0 %v1678_v3  ;;  %853 = vmatpush2.bf16.msra.mxu1 %v1675_v4  ;;  %v1767_v3 = vld [vmem:[#allocation4 + $0x34] ss:$8 sps:$4 sm:$0xff]   ;;  %v1765_v4 = vld [vmem:[#allocation4 + $0x30] ss:$8 sps:$4 sm:$0xff]  }
  0x65   :  { %904 = vmatprep.subr.bf16.mxu1 %v1704_v6  ;;  %v1768_v6 = vld [vmem:[#allocation4 + $0x20] ss:$8 sps:$4 sm:$0xff]  }
  0x66   :  { %814 = vmatmul.mubr.bf16.vlgmr.msra.gmra.mxu0 %v1380_v5  ;;  %v1770_v5 = vld [vmem:[#allocation4 + $0x24] ss:$8 sps:$4 sm:$0xff]  }
  0x67   :  { %864 = vmatpush1.bf16.msra.mxu0 %v1676_v7  ;;  %855 = vmatmul.mubr.bf16.vlgmr.msra.gmra.mxu1 %v1382_v8  ;;  %v1773_v7 = vld [vmem:[#allocation4 + $0x14] ss:$8 sps:$4 sm:$0xff]   ;;  %v1771_v8 = vld [vmem:[#allocation4 + $0x10] ss:$8 sps:$4 sm:$0xff]  }
  0x68   :  { %865 = vmatprep.subr.bf16.mxu0 %v1683_v9  ;;  %905 = vmatpush1.bf16.msra.mxu1 %v1702_v10  ;;  %v1776_v9 = vld [vmem:[#allocation4 + $0x4] ss:$8 sps:$4 sm:$0xff]   ;;  %v1774_v10 = vld [vmem:[#allocation4] ss:$8 sps:$4 sm:$0xff]  }
  0x69   :  { %936 = vmatprep.mubr.bf16.mxu1 %v1888_v15  ;;  %906 = vmatprep.subr.bf16.mxu1 %v1710_v11  ;;  %v1779_v11 = vld [vmem:[#allocation4 + $0xf4] ss:$8 sps:$4 sm:$0xff]  }
  0x6a   :  { %895 = vmatprep.mubr.bf16.mxu0 %v1385_v27  ;;  %v1785_v15 = vld [vmem:[#allocation4 + $0xd4] ss:$8 sps:$4 sm:$0xff]  }
  0x6b   :  { %866 = vmatpush1.bf16.msra.mxu0 %v1681_v12  ;;  %v1777_v12 = vld [vmem:[#allocation4 + $0xf0] ss:$8 sps:$4 sm:$0xff]  }
  0x6c   :  { %867 = vmatprep.subr.bf16.mxu0 %v1686_v13  ;;  %907 = vmatpush1.bf16.msra.mxu1 %v1708_v14  ;;  %v1782_v13 = vld [vmem:[#allocation4 + $0xe4] ss:$8 sps:$4 sm:$0xff]   ;;  %v1780_v14 = vld [vmem:[#allocation4 + $0xe0] ss:$8 sps:$4 sm:$0xff]   ;;  %v1801_v27 = vld [vmem:[#allocation6 + $0x78] sm:$0xff]  }
  0x6d   :  { %908 = vmatprep.subr.bf16.mxu1 %v1716_v16  ;;  %v1783_v16 = vld [vmem:[#allocation4 + $0xd0] ss:$8 sps:$4 sm:$0xff]  }
  0x6f   :  { %868 = vmatpush1.bf16.msra.mxu0 %v1684_v17  ;;  %v1788_v17 = vld [vmem:[#allocation4 + $0xc4] ss:$8 sps:$4 sm:$0xff]  }
  0x70   :  { %869 = vmatprep.subr.bf16.mxu0 %v1689_v18  ;;  %909 = vmatpush1.bf16.msra.mxu1 %v1714_v20  ;;  %v1786_v18 = vld [vmem:[#allocation4 + $0xc0] ss:$8 sps:$4 sm:$0xff]   ;;  %v1789_v20 = vld [vmem:[#allocation4 + $0xb0] ss:$8 sps:$4 sm:$0xff]  }
  0x71   :  { %910 = vmatprep.subr.bf16.mxu1 %v1722_v21  ;;  %v1794_v21 = vld [vmem:[#allocation4 + $0xa4] ss:$8 sps:$4 sm:$0xff]  }
  0x73   :  { %870 = vmatpush1.bf16.msra.mxu0 %v1687_v19  ;;  %v1791_v19 = vld [vmem:[#allocation4 + $0xb4] ss:$8 sps:$4 sm:$0xff]  }
  0x74   :  { %871 = vmatprep.subr.bf16.mxu0 %v1692_v22  ;;  %911 = vmatpush1.bf16.msra.mxu1 %v1720_v23  ;;  %v1792_v22 = vld [vmem:[#allocation4 + $0xa0] ss:$8 sps:$4 sm:$0xff]   ;;  %v1797_v23 = vld [vmem:[#allocation4 + $0x94] ss:$8 sps:$4 sm:$0xff]  }
  0x75   :  { %912 = vmatprep.subr.bf16.mxu1 %v1728_v24  ;;  %v1795_v24 = vld [vmem:[#allocation4 + $0x90] ss:$8 sps:$4 sm:$0xff]  }
  0x77   :  { %872 = vmatpush1.bf16.msra.mxu0 %v1690_v26  ;;  %v1798_v26 = vld [vmem:[#allocation4 + $0x80] ss:$8 sps:$4 sm:$0xff]  }
  0x78   :  { %873 = vmatprep.subr.bf16.mxu0 %v1695_v28  ;;  %913 = vmatpush1.bf16.msra.mxu1 %v1726_v29  ;;  %v1802_v28 = vld [vmem:[#allocation6 + $0x38] sm:$0xff]   ;;  %v1803_v29 = vld [vmem:[#allocation6 + $0x70] sm:$0xff]  }
  0x79   :  { %914 = vmatprep.subr.bf16.mxu1 %v1734_v30  ;;  %v1804_v30 = vld [vmem:[#allocation6 + $0x30] sm:$0xff]  }
  0x7b   :  { %874 = vmatpush1.bf16.msra.mxu0 %v1693_v31  ;;  %v1805_v31 = vld [vmem:[#allocation6 + $0x68] sm:$0xff]  }
  0x7c   :  { %875 = vmatprep.subr.bf16.mxu0 %v1698_v32  ;;  %915 = vmatpush1.bf16.msra.mxu1 %v1732_v33  ;;  %v1806_v32 = vld [vmem:[#allocation6 + $0x28] sm:$0xff]   ;;  %v1807_v33 = vld [vmem:[#allocation6 + $0x60] sm:$0xff]  }
  0x7d   :  { %916 = vmatprep.subr.bf16.mxu1 %v1740_v34  ;;  %v1808_v34 = vld [vmem:[#allocation6 + $0x20] sm:$0xff]  }
  0x7f   :  { %876 = vmatpush1.bf16.msra.mxu0 %v1696_v35  ;;  %v1809_v35 = vld [vmem:[#allocation6 + $0x58] sm:$0xff]  }
  0x80   :  { %877 = vmatprep.subr.bf16.mxu0 %v1701_v36  ;;  %917 = vmatpush1.bf16.msra.mxu1 %v1738_v37  ;;  %v1810_v36 = vld [vmem:[#allocation6 + $0x18] sm:$0xff]   ;;  %v1811_v37 = vld [vmem:[#allocation6 + $0x50] sm:$0xff]  }
  0x81   :  { %918 = vmatprep.subr.bf16.mxu1 %v1746_v38  ;;  %v1812_v38 = vld [vmem:[#allocation6 + $0x10] sm:$0xff]  }
  0x83   :  { %878 = vmatpush1.bf16.msra.mxu0 %v1699_v39 }
  0x84   :  { %879 = vmatprep.subr.bf16.mxu0 %v1707_v40  ;;  %919 = vmatpush1.bf16.msra.mxu1 %v1744_v41 }
  0x85   :  { %1153 = vmatprep.subr.bf16.mxu1 %v1755_v60 }
  0x87   :  { %880 = vmatpush2.bf16.msra.mxu0 %v1705_v42  ;;  %937 = vmatmul.mubr.bf16.vlgmr.msra.gmra.mxu1 %v1750_v44 }
  0x88   :  { %881 = vmatprep.subr.bf16.mxu0 %v1713_v43  ;;  %1154 = vmatpush1.bf16.msra.mxu1 %v1753_v59 }
  0x89   :  { %1155 = vmatprep.subr.bf16.mxu1 %v1758_v61 }
  0x8b   :  { %882 = vmatpush2.bf16.msra.mxu0 %v1711_v45 }
  0x8c   :  { %883 = vmatprep.subr.bf16.mxu0 %v1719_v46  ;;  %1156 = vmatpush1.bf16.msra.mxu1 %v1756_v62 }
  0x8d   :  { %1157 = vmatprep.subr.bf16.mxu1 %v1761_v63 }
  0x8f   :  { %884 = vmatpush2.bf16.msra.mxu0 %v1717_v47 }
  0x90   :  { %885 = vmatprep.subr.bf16.mxu0 %v1725_v48  ;;  %1158 = vmatpush1.bf16.msra.mxu1 %v1759_v0 }
  0x91   :  { %1159 = vmatprep.subr.bf16.mxu1 %v1764_v1 }
  0x93   :  { %886 = vmatpush2.bf16.msra.mxu0 %v1723_v49 }
  0x94   :  { %887 = vmatprep.subr.bf16.mxu0 %v1731_v50  ;;  %1160 = vmatpush1.bf16.msra.mxu1 %v1762_v2 }
  0x95   :  { %1161 = vmatprep.subr.bf16.mxu1 %v1767_v3 }
  0x97   :  { %888 = vmatpush2.bf16.msra.mxu0 %v1729_v51  ;;  %v186_v51 = vlaneseq }
  0x98   :  { %889 = vmatprep.subr.bf16.mxu0 %v1737_v52  ;;  %1162 = vmatpush1.bf16.msra.mxu1 %v1765_v4 }
  0x99   :  { %1163 = vmatprep.subr.bf16.mxu1 %v1770_v5  ;;  %v187_v52 = vshrl.u32 %v186_v51, 7 }
  0x9b   :  { %890 = vmatpush2.bf16.msra.mxu0 %v1735_v53  ;;  %v188_v53 = vsub.s32 0, %v187_v52 }
  0x9c   :  { %891 = vmatprep.subr.bf16.mxu0 %v1743_v54  ;;  %1164 = vmatpush1.bf16.msra.mxu1 %v1768_v6  ;;  %v184_v54 = vld [vmem:[%s1970_s2] sm:$0x3] }
  0x9d   :  { %1165 = vmatprep.subr.bf16.mxu1 %v1773_v7 }
  0x9f   :  { %892 = vmatpush2.bf16.msra.mxu0 %v1741_v55  ;;  %v192_v55 = vsub.s32 1, %v187_v52 }
  0xa0   :  { %893 = vmatprep.subr.bf16.mxu0 %v1749_v56  ;;  %1166 = vmatpush1.bf16.msra.mxu1 %v1771_v8  ;;  %v189_v56 = vrot.slane %v184_v54, %v188_v53 }
  0xa1   :  { %1167 = vmatprep.subr.bf16.mxu1 %v1776_v9 }
  0xa3   :  { %894 = vmatpush2.bf16.msra.mxu0 %v1747_v57  ;;  %v193_v57 = vrot.slane %v184_v54, %v192_v55 }
  0xa4   :  { %1168 = vmatpush1.bf16.msra.mxu1 %v1774_v10  ;;  %1548 = vmatprep.subr.bf16.mxu0 %v1801_v27  ;;  %v1813_v10 = vld [vmem:[#allocation6 + $0x48] sm:$0xff]  }
  0xa5   :  { %1169 = vmatprep.subr.bf16.mxu1 %v1779_v11  ;;  %v1814_v11 = vld [vmem:[#allocation6 + $0x8] sm:$0xff]  }
  0xa6   :  { %896 = vmatmul.mubr.bf16.vlgmr.msra.gmra.mxu0 %v1384_v58 }
  0xa7   :  { %1549 = vmatpush3.bf16.msra.mxu0 %v1802_v28  ;;  %v1531_v28 = vld [vmem:[%s1974_s6] ss:$0 sm:$0xff] }
  0xa8   :  { %1170 = vmatpush2.bf16.msra.mxu1 %v1777_v12  ;;  %1550 = vmatprep.subr.bf16.mxu0 %v1803_v29  ;;  %v1815_v12 = vld [vmem:[#allocation6 + $0x40] sm:$0xff]  }
  0xa9   :  { %1171 = vmatprep.subr.bf16.mxu1 %v1782_v13  ;;  %v1816_v13 = vld [vmem:[#allocation6] sm:$0xff]  }
  0xab   :  { %1551 = vmatpush3.bf16.msra.mxu0 %v1804_v30 }
  0xac   :  { %1172 = vmatpush2.bf16.msra.mxu1 %v1780_v14  ;;  %1552 = vmatprep.subr.bf16.mxu0 %v1805_v31  ;;  %v981_v14 = vld [vmem:[%s1972_s4] sm:$0x3] }
  0xad   :  { %1173 = vmatprep.subr.bf16.mxu1 %v1785_v15  ;;  %v986_v15 = vrot.slane %v981_v14, %v188_v53 }
  0xaf   :  { %1553 = vmatpush3.bf16.msra.mxu0 %v1806_v32 }
  0xb0   :  { %1174 = vmatpush2.bf16.msra.mxu1 %v1783_v16  ;;  %1554 = vmatprep.subr.bf16.mxu0 %v1807_v33  ;;  %v990_v16 = vrot.slane %v981_v14, %v192_v55 }
  0xb1   :  { %1175 = vmatprep.subr.bf16.mxu1 %v1788_v17 }
  0xb3   :  { %1555 = vmatpush3.bf16.msra.mxu0 %v1808_v34 }
  0xb4   :  { %1176 = vmatpush2.bf16.msra.mxu1 %v1786_v18  ;;  %1556 = vmatprep.subr.bf16.mxu0 %v1809_v35 }
  0xb5   :  { %1177 = vmatprep.subr.bf16.mxu1 %v1791_v19 }
  0xb7   :  { %1557 = vmatpush3.bf16.msra.mxu0 %v1810_v36 }
  0xb8   :  { %1178 = vmatpush2.bf16.msra.mxu1 %v1789_v20  ;;  %1558 = vmatprep.subr.bf16.mxu0 %v1811_v37 }
  0xb9   :  { %1179 = vmatprep.subr.bf16.mxu1 %v1794_v21 }
  0xbb   :  { %1559 = vmatpush3.bf16.msra.mxu0 %v1812_v38 }
  0xbc   :  { %1180 = vmatpush2.bf16.msra.mxu1 %v1792_v22  ;;  %1560 = vmatprep.subr.bf16.mxu0 %v1813_v10 }
  0xbd   :  { %1181 = vmatprep.subr.bf16.mxu1 %v1797_v23 }
  0xbf   :  { %1561 = vmatpush3.bf16.msra.mxu0 %v1814_v11 }
  0xc0   :  { %1182 = vmatpush2.bf16.msra.mxu1 %v1795_v24  ;;  %1562 = vmatprep.subr.bf16.mxu0 %v1815_v12 }
  0xc1   :  { %1183 = vmatprep.subr.bf16.mxu1 %v1800_v25 }
  0xc3   :  { %1563 = vmatpush3.bf16.msra.mxu0 %v1816_v13 }
  0xc4   :  { %1184 = vmatpush2.bf16.msra.mxu1 %v1798_v26 }
 0x126   :  { %v815_v39 = vpop.f32.mrf.mxu0 }
 0x127   :  { %v856_v41 = vpop.f32.mrf.mxu1  ;;  %v816_v58 = vadd.f32 %v815_v39, %v189_v56 }
 0x128   :  { %v817_v40 = vpop.f32.mrf.mxu0 }
 0x129   :  { %v858_v43 = vpop.f32.mrf.mxu1  ;;  %v818_v59 = vadd.f32 %v817_v40, %v193_v57  ;;  %v857_v60 = vadd.f32 %v856_v41, %v816_v58 }
 0x12a   :  { %v819_v42 = vpop.f32.mrf.mxu0 }
 0x12b   :  { %v860_v45 = vpop.f32.mrf.mxu1  ;;  %v859_v62 = vadd.f32 %v858_v43, %v818_v59 }
 0x12c   :  { %v820_v44 = vpop.f32.mrf.mxu0 }
 0x12d   :  { %v861_v46 = vpop.f32.mrf.mxu1 }
 0x147   :  { %v938_v47 = vpop.f32.mrf.mxu1 }
 0x149   :  { %v940_v48 = vpop.f32.mrf.mxu1 }
 0x14b   :  { %v942_v49 = vpop.f32.mrf.mxu1 }
 0x14d   :  { %v943_v50 = vpop.f32.mrf.mxu1 }
 0x166   :  { %v897_v61 = vpop.f32.mrf.mxu0 }
 0x167   :  { %v898_v63 = vadd.f32 %v897_v61, %v857_v60 }
 0x168   :  { %v899_v0 = vpop.f32.mrf.mxu0 }
 0x169   :  { %v939_v1 = vadd.f32 %v938_v47, %v898_v63  ;;  %v900_v2 = vadd.f32 %v899_v0, %v859_v62 }
 0x16a   :  { %v901_v3 = vpop.f32.mrf.mxu0 }
 0x16b   :  { %v941_v4 = vadd.f32 %v940_v48, %v900_v2  ;;  %v945_v5 = vmax.f32 %v939_v1, 0.0 }
 0x16c   :  { %v902_v6 = vpop.f32.mrf.mxu0 }
 0x16d   :  { %v946_v7 = vmax.f32 %v941_v4, 0.0  ;;  %v947_v9 = vpack.c.bf16 %v945_v5, %v945_v5 }
 0x16f   :  { %v948_v8 = vpack.c.bf16 %v946_v7, %v946_v7 }
 0x171   :  { %1185 = vmatprep.mubr.bf16.mxu1 %v948_v8 }
 0x172   :  { %1186 = vmatmul.mubr.bf16.vlgmr.msra.gmra.mxu1 %v947_v9 }
 0x232   :  { %v1187_v17 = vpop.f32.mrf.mxu1 }
 0x233   :  { %v1188_v18 = vadd.f32 %v1187_v17, %v986_v15 }
 0x234   :  { %v1189_v19 = vpop.f32.mrf.mxu1 }
 0x235   :  { %v1190_v20 = vadd.f32 %v1189_v19, %v990_v16  ;;  %v1194_v21 = vmax.f32 %v1188_v18, 0.0 }
 0x236   :  { %v1191_v22 = vpop.f32.mrf.mxu1 }
 0x237   :  { %v1195_v23 = vmax.f32 %v1190_v20, 0.0  ;;  %v1196_v26 = vpack.c.bf16 %v1194_v21, %v1194_v21 }
 0x238   :  { %v1192_v24 = vpop.f32.mrf.mxu1 }
 0x239   :  { %v1197_v25 = vpack.c.bf16 %v1195_v23, %v1195_v23 }
 0x23b   :  { %1365 = vmatprep.mubr.bf16.mxu0 %v1197_v25 }
 0x23c   :  { %1366 = vmatmul.mubr.bf16.vlgmr.msra.gmra.mxu0 %v1196_v26 }
 0x2fc   :  { %v1564_v27 = vpop.f32.mrf.mxu0 }
 0x2fe   :  { %v1565_v29 = vpop.f32.mrf.mxu0 }
 0x2ff   :  { %v1566_v30 = vadd.f32 %v1565_v29, %v1564_v27 }
 0x300   :  { %v1567_v31 = vpop.f32.mrf.mxu0 }
 0x301   :  { %v1368_v32 = vadd.f32 %v1566_v30, %v1531_v28 }
 0x302   :  { %v1568_v33 = vpop.f32.mrf.mxu0 }
 0x303   :  { %1373 = vst [vmem:[%s1975_s7] sm:$0xff] %v1368_v32 }
 0x304   :  { %1378 = vsyncpa [#allocation3], 1 }
 0x305   :  { %1379 = vsyncpa [#allocation5], 1 }

</bundles_post_ra>
